<compile_context>
chip_gen: v7x
topology: tpu7x:2x2x1
jax: 0.10.0
libtpu: 0.0.40
codegen_flags: <defaults>
</compile_context>

<pallas_src>
import math
from functools import partial

import jax
import jax.numpy as jnp
from jax.experimental import pallas as pl
from jax.experimental.pallas import tpu as pltpu


def _mpnn_layer_kernel(
    mnorms_ref,    # (1, TA, N)   f32 : norms, with -1.0 sentinel where edge_mask == 0
    amask_ref,     # (1, TA, 1)   f32 : atom mask (destination rows)
    feat_src_ref,  # (1, N, Cin)  f32 : source-atom features (full row of the batch)
    feat_dst_ref,  # (1, TA, Cin) f32 : destination-atom features (this row tile)
    radw_ref,      # (n_blk, Cin) f32 : selected radial-mixing rows (+ bias as last row)
    w1a_ref,       # (Cin, H)          first half of MLP w1 (acts on feat_mp)
    w1b_ref,       # (Cin, H)          second half of MLP w1 (acts on feat)
    b1_ref,        # (1, H)
    w2_ref,        # (H, Cout_pad)     zero-padded to a multiple of 128 lanes
    b2_ref,        # (1, Cout_pad)
    out_ref,       # (1, TA, Cout_pad)
    *,
    trig_basis,
    rpow,
    hard_cut_rad,
    soft_cut_rad,
    soft_cut_width,
    negative_slope,
):
    r = mnorms_ref[0]                         # (TA, N), dense: N on lanes, TA on sublanes
    valid = (r >= 0.0).astype(jnp.float32)    # == edge_mask
    pos = (r > 0.0).astype(jnp.float32)       # edge_mask & (norms > 0)  (RadPolyTrig mask)

    # ------------- MaskLevel cutoff factor (cutoff_type = ['soft', 'hard']) -------------
    em = valid
    if hard_cut_rad is not None:
        em = em * (r < hard_cut_rad).astype(jnp.float32)
    if soft_cut_rad is not None:
        em = em * jax.nn.sigmoid((soft_cut_rad - r) / soft_cut_width)

    # ------------- RadPolyTrig trig basis via angle-addition recurrence -------------
    # Reference init: scales = [0..tb, 0..tb], phases = [0]*(tb+1) + [pi/2]*(tb+1),
    # so the columns are [sin(2*pi*k*r)]_{k=0..tb} ++ [cos(2*pi*k*r)]_{k=0..tb}.
    # The sin(0*r) column is identically zero, so it (and its weight rows) is dropped.
    # TODO(synk): trained/arbitrary scales & phases would need the generic sin() path.
    sin_cols = [None]                          # k = 0 -> identically zero, skipped
    cos_cols = [pos]                           # k = 0 -> cos(0) = 1, masked
    if trig_basis >= 1:
        theta = (2.0 * math.pi) * r
        s1 = jnp.sin(theta) * pos
        c1 = jnp.cos(theta) * pos
        sin_cols.append(s1)
        cos_cols.append(c1)
        sk, ck = s1, c1
        for _ in range(trig_basis - 1):
            sk, ck = sk * c1 + ck * s1, ck * c1 - sk * s1
            sin_cols.append(sk)
            cos_cols.append(ck)
    trig_cols = sin_cols + cos_cols            # length n_trig = 2*(trig_basis+1)

    # ------------- masked inverse powers r^-p, running product, pre-scaled by em -------
    safe_r = jnp.where(pos > 0.0, r, 1.0)
    inv = pos / safe_r                         # 1/r on real edges, 0 elsewhere
    pw = [pos * em]                            # p = 0 (already carries the cutoff mask)
    for _ in range(rpow):
        pw.append(pw[-1] * inv)

    # ------------- per-edge design matrix P : (TA, n_blk * N) -------------
    # Block order must match radw_ref rows: (t, p) for t = 1..n_trig-1, p = 0..rpow,
    # then the bias block (raw cutoff mask em).
    cols = []
    for t in range(1, len(trig_cols)):
        tc = trig_cols[t]
        for p in range(rpow + 1):
            cols.append(tc * pw[p])
    cols.append(em)
    P = jnp.concatenate(cols, axis=-1)         # (TA, n_blk*N)

    # ------------- RHS : F[(k, x), c] = radw[k, c] * feat_src[x, c] -------------
    feat_src = feat_src_ref[0]                 # (N, Cin)
    F = radw_ref[...][:, None, :] * feat_src[None, :, :]          # (n_blk, N, Cin)
    F = F.reshape(P.shape[1], feat_src.shape[-1])                 # (n_blk*N, Cin)

    # ------------- fused radial mixing + MaskLevel + message passing -------------
    # feat_mp[a, c] = sum_x edge[a, x, c] * feat[x, c]   as ONE MXU matmul.
    feat_mp = jnp.dot(P, F, preferred_element_type=jnp.float32)   # (TA, Cin)

    # ------------- BasicMLP on [feat_mp, feat_dst] (concat avoided by splitting w1) ----
    h = (jnp.dot(feat_mp, w1a_ref[...], preferred_element_type=jnp.float32)
         + jnp.dot(feat_dst_ref[0], w1b_ref[...], preferred_element_type=jnp.float32)
         + b1_ref[...])
    h = jnp.where(h >= 0.0, h, negative_slope * h)                # LeakyReLU(0.01)
    y = jnp.dot(h, w2_ref[...], preferred_element_type=jnp.float32) + b2_ref[...]
    y = y * amask_ref[0]                                          # torch.where(atom_mask, y, 0)
    out_ref[0] = y.astype(out_ref.dtype)                          # lane-dense (Cout_pad) store


def _choose_row_tile(n_atoms, n_blk):
    """Pick a destination-row tile so P=(TA, n_blk*N) f32 + temporaries stay well under VMEM."""
    budget = 20 * 1024 * 1024                      # headroom for v7x (64 MiB) / v5e scoped VMEM
    ta = budget // ((n_blk + 8) * n_atoms * 4)
    ta = int(max(8, min(ta, 256, n_atoms)))
    if ta >= n_atoms:
        return n_atoms
    ta = (ta // 8) * 8
    if n_atoms % 8 != 0:                           # keep edge-block rules simple for ragged N
        return n_atoms
    return max(ta, 8)


def _mpnn_layer(feats, atom_mask_f, mnorms, layer_params, *,
                hard_cut_rad, soft_cut_rad, soft_cut_width, row_tile=None):
    B, N, cin = feats.shape
    rad_w = layer_params["rad_w"]                  # (2*num_rad, cin), rows k = t*(rpow+1)+p
    rad_b = layer_params["rad_b"]                  # (1, cin)
    w1, b1 = layer_params["w1"], layer_params["b1"]
    w2, b2 = layer_params["w2"], layer_params["b2"]
    trig_basis = layer_params["trig_basis"]
    rpow = layer_params["rpow"]

    rp1 = rpow + 1
    n_trig = 2 * (trig_basis + 1)
    n_blk = (n_trig - 1) * rp1 + 1                 # t=0 (sin(0)==0) rows dropped, +1 bias row
    H = w1.shape[1]
    cout = w2.shape[1]
    cout_pad = ((cout + 127) // 128) * 128

    # Radial-mixing rows in kernel block order: drop the t=0 block (first rp1 rows,
    # identically-zero trig column), keep original (t-major, p-minor) order, append bias.
    radw_sel = jnp.concatenate([rad_w[rp1:], rad_b], axis=0)       # (n_blk, cin)

    # Split w1 (concat avoidance) and zero-pad the output head to a lane-dense width.
    w1a, w1b = w1[:cin], w1[cin:]
    w2p = jnp.zeros((H, cout_pad), jnp.float32).at[:, :cout].set(w2)
    b2p = jnp.zeros((1, cout_pad), jnp.float32).at[:, :cout].set(b2)

    ta = _choose_row_tile(N, n_blk) if row_tile is None else row_tile
    grid = (B, pl.cdiv(N, ta))

    kernel = partial(_mpnn_layer_kernel,
                     trig_basis=trig_basis,
                     rpow=rpow,
                     hard_cut_rad=hard_cut_rad,
                     soft_cut_rad=soft_cut_rad,
                     soft_cut_width=soft_cut_width,
                     negative_slope=0.01)

    out_padded = pl.pallas_call(
        kernel,
        out_shape=jax.ShapeDtypeStruct((B, N, cout_pad), jnp.float32),
        grid=grid,
        in_specs=[
            pl.BlockSpec((1, ta, N), lambda b, i: (b, i, 0)),       # masked norms row tile
            pl.BlockSpec((1, ta, 1), lambda b, i: (b, i, 0)),       # atom mask row tile
            pl.BlockSpec((1, N, cin), lambda b, i: (b, 0, 0)),      # source features (full)
            pl.BlockSpec((1, ta, cin), lambda b, i: (b, i, 0)),     # destination features
            pl.BlockSpec((n_blk, cin), lambda b, i: (0, 0)),        # radial rows + bias
            pl.BlockSpec((cin, H), lambda b, i: (0, 0)),            # w1 (feat_mp half)
            pl.BlockSpec((cin, H), lambda b, i: (0, 0)),            # w1 (feat half)
            pl.BlockSpec((1, H), lambda b, i: (0, 0)),              # b1
            pl.BlockSpec((H, cout_pad), lambda b, i: (0, 0)),       # w2 (lane-padded)
            pl.BlockSpec((1, cout_pad), lambda b, i: (0, 0)),       # b2 (lane-padded)
        ],
        out_specs=pl.BlockSpec((1, ta, cout_pad), lambda b, i: (b, i, 0)),
        compiler_params=pltpu.CompilerParams(
            dimension_semantics=("parallel", "parallel"),
            vmem_limit_bytes=48 * 1024 * 1024),
    )(mnorms, atom_mask_f, feats, feats, radw_sel, w1a, w1b, b1, w2p, b2p)

    return out_padded[..., :cout]


def init_params(key, channels_in, channels_out, *, num_layers=1, channels_mlp=-1,
                num_hidden=1, layer_width=256, basis_set=(3, 3)):
    """Deterministic, synthetic parameter init mirroring InputMPNN.__init__ shapes.

    RadPolyTrig scales/phases are their deterministic reference-init values and are
    baked into the kernel (sin/cos recurrence), so they are not stored here.
    """
    assert num_hidden == 1, "BasicMLP implemented for the default num_hidden=1"
    trig_basis, rpow = basis_set
    num_rad = (trig_basis + 1) * (rpow + 1)
    if channels_mlp < 0:
        channels_mlp = max(channels_in, channels_out)
    channels_lvls = [channels_in] + [channels_mlp] * (num_layers - 1) + [2 * channels_out]

    params = []
    for chan_in, chan_out in zip(channels_lvls[:-1], channels_lvls[1:]):
        key, k1, k2, k3, k4, k5, k6 = jax.random.split(key, 7)

        # RadPolyTrig mixing linear: 2*num_rad -> chan_in, stored (in, out);
        # row k = t*(rpow+1)+p  (trig index major, power index minor — reference layout).
        lim = 1.0 / math.sqrt(2 * num_rad)
        rad_w = jax.random.uniform(k1, (2 * num_rad, chan_in), jnp.float32, -lim, lim)
        rad_b = jax.random.uniform(k2, (1, chan_in), jnp.float32, -lim, lim)

        # BasicMLP: 2*chan_in -> layer_width -> chan_out
        lim1 = 1.0 / math.sqrt(2 * chan_in)
        w1 = jax.random.uniform(k3, (2 * chan_in, layer_width), jnp.float32, -lim1, lim1)
        b1 = jax.random.uniform(k4, (1, layer_width), jnp.float32, -lim1, lim1)
        lim2 = 1.0 / math.sqrt(layer_width)
        w2 = jax.random.uniform(k5, (layer_width, chan_out), jnp.float32, -lim2, lim2)
        b2 = jax.random.uniform(k6, (1, chan_out), jnp.float32, -lim2, lim2)

        params.append(dict(rad_w=rad_w, rad_b=rad_b, w1=w1, b1=b1, w2=w2, b2=b2,
                           trig_basis=trig_basis, rpow=rpow))
    return params


def input_mpnn_forward(params, features, atom_mask, edge_features, edge_mask,
                       norms, sq_norms, *, channels_out,
                       soft_cut_rad=None, soft_cut_width=None, hard_cut_rad=None):
    # edge_features is unused by the reference module; sq_norms only feeds the
    # gaussian_mask branch of MaskLevel, which this module never enables.
    del edge_features, sq_norms
    s = features.shape                               # (B, N, channels_in)
    B, N, _ = s
    feats = features.astype(jnp.float32)
    atom_mask_f = atom_mask.astype(jnp.float32).reshape(B, N, 1)

    # Fold edge_mask into norms: -1.0 marks padded edges, so the kernel needs only one
    # (B, N, N) stream per layer.  r == 0 (self) edges with edge_mask == 1 stay at 0,
    # preserving the reference's bias-only self message through MaskLevel.
    mnorms = jnp.where(edge_mask, norms.astype(jnp.float32), jnp.float32(-1.0))

    for layer in params:
        feats = _mpnn_layer(feats, atom_mask_f, mnorms, layer,
                            hard_cut_rad=hard_cut_rad,
                            soft_cut_rad=soft_cut_rad,
                            soft_cut_width=soft_cut_width)

    # "!NB: again, the last line puts zdim at 0." — raw view, exactly as torch .view()
    out = feats.reshape((2,) + s[0:2] + (channels_out, 1))
    return out  # the GVec would wrap this as {(0, 0): out}


if __name__ == "__main__":
    B, N = 2, 8
    channels_in, channels_out = 4, 8
    layer_width = 64
    soft_cut_rad, soft_cut_width, hard_cut_rad = 1.5, 0.5, 2.0

    params = init_params(jax.random.PRNGKey(1), channels_in, channels_out,
                         num_layers=1, layer_width=layer_width, basis_set=(3, 3))

    key = jax.random.PRNGKey(0)
    kf, kn = jax.random.split(key, 2)
    features = jax.random.normal(kf, (B, N, channels_in), jnp.float32)

    # batch 0 has 6 real atoms, batch 1 has 8
    n_atoms = jnp.array([6, 8])
    atom_mask = jnp.arange(N)[None, :] < n_atoms[:, None]          # (B, N) bool
    edge_mask = atom_mask[:, :, None] & atom_mask[:, None, :]      # (B, N, N) bool

    raw = jnp.abs(jax.random.normal(kn, (B, N, N), jnp.float32)) * 1.2
    raw = 0.5 * (raw + jnp.swapaxes(raw, 1, 2))
    norms = raw * (1.0 - jnp.eye(N, dtype=jnp.float32)[None])      # zero diagonal
    sq_norms = norms ** 2
    edge_features = None                                            # unused

    out = input_mpnn_forward(params, features, atom_mask, edge_features, edge_mask,
                             norms, sq_norms, channels_out=channels_out,
                             soft_cut_rad=soft_cut_rad,
                             soft_cut_width=soft_cut_width,
                             hard_cut_rad=hard_cut_rad)
    out = jax.block_until_ready(out)
    assert out.shape == (2, B, N, channels_out, 1), out.shape
    assert bool(jnp.all(jnp.isfinite(out)))
    print("KERNEL_OK")
</pallas_src>

<mosaic_0001>
module attributes {stable_mosaic.version = 11 : i64} {
  func.func @_mpnn_layer_kernel(%arg0: i32, %arg1: i32, %arg2: memref<1x8x8xf32, #tpu.memory_space<vmem>>, %arg3: memref<1x8x1xf32, #tpu.memory_space<vmem>>, %arg4: memref<1x8x4xf32, #tpu.memory_space<vmem>>, %arg5: memref<1x8x4xf32, #tpu.memory_space<vmem>>, %arg6: memref<29x4xf32, #tpu.memory_space<vmem>>, %arg7: memref<4x64xf32, #tpu.memory_space<vmem>>, %arg8: memref<4x64xf32, #tpu.memory_space<vmem>>, %arg9: memref<1x64xf32, #tpu.memory_space<vmem>>, %arg10: memref<64x128xf32, #tpu.memory_space<vmem>>, %arg11: memref<1x128xf32, #tpu.memory_space<vmem>>, %arg12: memref<1x8x128xf32, #tpu.memory_space<vmem>>) attributes {dimension_semantics = [#tpu.dimension_semantics<parallel>, #tpu.dimension_semantics<parallel>], iteration_bounds = array<i64: 2, 1>, scalar_prefetch = 0 : i64, scratch_operands = 0 : i64, tpu.core_type = #tpu.core_type<tc>, window_params = [{transform_indices = @transform_0, window_bounds = array<i64: 1, 8, 8>}, {transform_indices = @transform_1, window_bounds = array<i64: 1, 8, 1>}, {transform_indices = @transform_2, window_bounds = array<i64: 1, 8, 4>}, {transform_indices = @transform_3, window_bounds = array<i64: 1, 8, 4>}, {pipeline_mode = #tpu.pipeline_mode<synchronous>, transform_indices = @transform_4, window_bounds = array<i64: 29, 4>}, {pipeline_mode = #tpu.pipeline_mode<synchronous>, transform_indices = @transform_5, window_bounds = array<i64: 4, 64>}, {pipeline_mode = #tpu.pipeline_mode<synchronous>, transform_indices = @transform_6, window_bounds = array<i64: 4, 64>}, {pipeline_mode = #tpu.pipeline_mode<synchronous>, transform_indices = @transform_7, window_bounds = array<i64: 1, 64>}, {pipeline_mode = #tpu.pipeline_mode<synchronous>, transform_indices = @transform_8, window_bounds = array<i64: 64, 128>}, {pipeline_mode = #tpu.pipeline_mode<synchronous>, transform_indices = @transform_9, window_bounds = array<i64: 1, 128>}, {transform_indices = @transform_10, window_bounds = array<i64: 1, 8, 128>}]} {
    %c0 = arith.constant 0 : index
    %c0_0 = arith.constant 0 : index
    %c0_1 = arith.constant 0 : index
    %0 = vector.load %arg2[%c0, %c0_0, %c0_1] : memref<1x8x8xf32, #tpu.memory_space<vmem>>, vector<1x8x8xf32>
    %1 = vector.shape_cast %0 : vector<1x8x8xf32> to vector<8x8xf32>
    %cst = arith.constant 0.000000e+00 : f32
    %2 = vector.broadcast %cst : f32 to vector<8x8xf32>
    %3 = arith.cmpf oge, %1, %2 : vector<8x8xf32>
    %4 = arith.extui %3 : vector<8x8xi1> to vector<8x8xi32>
    %5 = arith.sitofp %4 : vector<8x8xi32> to vector<8x8xf32>
    %cst_2 = arith.constant 0.000000e+00 : f32
    %6 = vector.broadcast %cst_2 : f32 to vector<8x8xf32>
    %7 = arith.cmpf ogt, %1, %6 : vector<8x8xf32>
    %8 = arith.extui %7 : vector<8x8xi1> to vector<8x8xi32>
    %9 = arith.sitofp %8 : vector<8x8xi32> to vector<8x8xf32>
    %cst_3 = arith.constant 2.000000e+00 : f32
    %10 = vector.broadcast %cst_3 : f32 to vector<8x8xf32>
    %11 = arith.cmpf olt, %1, %10 : vector<8x8xf32>
    %12 = arith.extui %11 : vector<8x8xi1> to vector<8x8xi32>
    %13 = arith.sitofp %12 : vector<8x8xi32> to vector<8x8xf32>
    %14 = arith.mulf %5, %13 : vector<8x8xf32>
    %cst_4 = arith.constant 1.500000e+00 : f32
    %15 = vector.broadcast %cst_4 : f32 to vector<8x8xf32>
    %16 = arith.subf %15, %1 : vector<8x8xf32>
    %cst_5 = arith.constant 5.000000e-01 : f32
    %17 = vector.broadcast %cst_5 : f32 to vector<8x8xf32>
    %18 = arith.divf %16, %17 : vector<8x8xf32>
    %19 = arith.negf %18 : vector<8x8xf32>
    %20 = math.exp %19 : vector<8x8xf32>
    %cst_6 = arith.constant 1.000000e+00 : f32
    %21 = vector.broadcast %cst_6 : f32 to vector<8x8xf32>
    %22 = arith.addf %21, %20 : vector<8x8xf32>
    %23 = arith.divf %21, %22 : vector<8x8xf32>
    %24 = arith.mulf %14, %23 : vector<8x8xf32>
    %cst_7 = arith.constant 6.28318548 : f32
    %25 = vector.broadcast %cst_7 : f32 to vector<8x8xf32>
    %26 = arith.mulf %25, %1 : vector<8x8xf32>
    %27 = math.sin %26 : vector<8x8xf32>
    %28 = arith.mulf %27, %9 : vector<8x8xf32>
    %29 = math.cos %26 : vector<8x8xf32>
    %30 = arith.mulf %29, %9 : vector<8x8xf32>
    %31 = arith.mulf %28, %30 : vector<8x8xf32>
    %32 = arith.mulf %30, %28 : vector<8x8xf32>
    %33 = arith.addf %31, %32 : vector<8x8xf32>
    %34 = arith.mulf %30, %30 : vector<8x8xf32>
    %35 = arith.mulf %28, %28 : vector<8x8xf32>
    %36 = arith.subf %34, %35 : vector<8x8xf32>
    %37 = arith.mulf %33, %30 : vector<8x8xf32>
    %38 = arith.mulf %36, %28 : vector<8x8xf32>
    %39 = arith.addf %37, %38 : vector<8x8xf32>
    %40 = arith.mulf %36, %30 : vector<8x8xf32>
    %41 = arith.mulf %33, %28 : vector<8x8xf32>
    %42 = arith.subf %40, %41 : vector<8x8xf32>
    %cst_8 = arith.constant 0.000000e+00 : f32
    %43 = vector.broadcast %cst_8 : f32 to vector<8x8xf32>
    %44 = arith.cmpf ogt, %9, %43 : vector<8x8xf32>
    %cst_9 = arith.constant 1.000000e+00 : f32
    %45 = vector.broadcast %cst_9 : f32 to vector<8x8xf32>
    %46 = arith.select %44, %1, %45 : vector<8x8xi1>, vector<8x8xf32>
    %47 = arith.divf %9, %46 : vector<8x8xf32>
    %48 = arith.mulf %9, %24 : vector<8x8xf32>
    %49 = arith.mulf %48, %47 : vector<8x8xf32>
    %50 = arith.mulf %49, %47 : vector<8x8xf32>
    %51 = arith.mulf %50, %47 : vector<8x8xf32>
    %52 = arith.mulf %28, %48 : vector<8x8xf32>
    %53 = arith.mulf %28, %49 : vector<8x8xf32>
    %54 = arith.mulf %28, %50 : vector<8x8xf32>
    %55 = arith.mulf %28, %51 : vector<8x8xf32>
    %56 = arith.mulf %33, %48 : vector<8x8xf32>
    %57 = arith.mulf %33, %49 : vector<8x8xf32>
    %58 = arith.mulf %33, %50 : vector<8x8xf32>
    %59 = arith.mulf %33, %51 : vector<8x8xf32>
    %60 = arith.mulf %39, %48 : vector<8x8xf32>
    %61 = arith.mulf %39, %49 : vector<8x8xf32>
    %62 = arith.mulf %39, %50 : vector<8x8xf32>
    %63 = arith.mulf %39, %51 : vector<8x8xf32>
    %64 = arith.mulf %9, %48 : vector<8x8xf32>
    %65 = arith.mulf %9, %49 : vector<8x8xf32>
    %66 = arith.mulf %9, %50 : vector<8x8xf32>
    %67 = arith.mulf %9, %51 : vector<8x8xf32>
    %68 = arith.mulf %30, %48 : vector<8x8xf32>
    %69 = arith.mulf %30, %49 : vector<8x8xf32>
    %70 = arith.mulf %30, %50 : vector<8x8xf32>
    %71 = arith.mulf %30, %51 : vector<8x8xf32>
    %72 = arith.mulf %36, %48 : vector<8x8xf32>
    %73 = arith.mulf %36, %49 : vector<8x8xf32>
    %74 = arith.mulf %36, %50 : vector<8x8xf32>
    %75 = arith.mulf %36, %51 : vector<8x8xf32>
    %76 = arith.mulf %42, %48 : vector<8x8xf32>
    %77 = arith.mulf %42, %49 : vector<8x8xf32>
    %78 = arith.mulf %42, %50 : vector<8x8xf32>
    %79 = arith.mulf %42, %51 : vector<8x8xf32>
    %80 = tpu.concatenate %52, %53, %54, %55, %56, %57, %58, %59, %60, %61, %62, %63, %64, %65, %66, %67 in 1 : vector<8x8xf32>, vector<8x8xf32>, vector<8x8xf32>, vector<8x8xf32>, vector<8x8xf32>, vector<8x8xf32>, vector<8x8xf32>, vector<8x8xf32>, vector<8x8xf32>, vector<8x8xf32>, vector<8x8xf32>, vector<8x8xf32>, vector<8x8xf32>, vector<8x8xf32>, vector<8x8xf32>, vector<8x8xf32> -> vector<8x128xf32>
    %81 = tpu.concatenate %68, %69, %70, %71, %72, %73, %74, %75, %76, %77, %78, %79, %24 in 1 : vector<8x8xf32>, vector<8x8xf32>, vector<8x8xf32>, vector<8x8xf32>, vector<8x8xf32>, vector<8x8xf32>, vector<8x8xf32>, vector<8x8xf32>, vector<8x8xf32>, vector<8x8xf32>, vector<8x8xf32>, vector<8x8xf32>, vector<8x8xf32> -> vector<8x104xf32>
    %82 = tpu.concatenate %80, %81 in 1 : vector<8x128xf32>, vector<8x104xf32> -> vector<8x232xf32>
    %c0_10 = arith.constant 0 : index
    %c0_11 = arith.constant 0 : index
    %c0_12 = arith.constant 0 : index
    %83 = vector.load %arg4[%c0_10, %c0_11, %c0_12] : memref<1x8x4xf32, #tpu.memory_space<vmem>>, vector<1x8x4xf32>
    %84 = vector.shape_cast %83 : vector<1x8x4xf32> to vector<8x4xf32>
    %c0_13 = arith.constant 0 : index
    %c0_14 = arith.constant 0 : index
    %85 = vector.load %arg6[%c0_13, %c0_14] : memref<29x4xf32, #tpu.memory_space<vmem>>, vector<29x4xf32>
    %86 = vector.shape_cast %85 : vector<29x4xf32> to vector<29x1x4xf32>
    %87 = vector.shape_cast %84 : vector<8x4xf32> to vector<1x8x4xf32>
    %88 = vector.broadcast %86 : vector<29x1x4xf32> to vector<29x8x4xf32>
    %89 = vector.broadcast %87 : vector<1x8x4xf32> to vector<29x8x4xf32>
    %90 = arith.mulf %88, %89 : vector<29x8x4xf32>
    %91 = vector.shape_cast %90 : vector<29x8x4xf32> to vector<232x4xf32>
    %cst_15 = arith.constant dense<0.000000e+00> : vector<8x4xf32>
    %92 = tpu.matmul %82, %91, %cst_15 {dimension_numbers = #tpu.dot_dimension_numbers<[1], [0], [0], [1], [0, 0, 1, 1], [], []>} : vector<8x232xf32>, vector<232x4xf32>, vector<8x4xf32> -> vector<8x4xf32>
    %c0_16 = arith.constant 0 : index
    %c0_17 = arith.constant 0 : index
    %93 = vector.load %arg7[%c0_16, %c0_17] : memref<4x64xf32, #tpu.memory_space<vmem>>, vector<4x64xf32>
    %cst_18 = arith.constant dense<0.000000e+00> : vector<8x64xf32>
    %94 = tpu.matmul %92, %93, %cst_18 {dimension_numbers = #tpu.dot_dimension_numbers<[1], [0], [0], [1], [0, 0, 1, 1], [], []>} : vector<8x4xf32>, vector<4x64xf32>, vector<8x64xf32> -> vector<8x64xf32>
    %c0_19 = arith.constant 0 : index
    %c0_20 = arith.constant 0 : index
    %c0_21 = arith.constant 0 : index
    %95 = vector.load %arg5[%c0_19, %c0_20, %c0_21] : memref<1x8x4xf32, #tpu.memory_space<vmem>>, vector<1x8x4xf32>
    %96 = vector.shape_cast %95 : vector<1x8x4xf32> to vector<8x4xf32>
    %c0_22 = arith.constant 0 : index
    %c0_23 = arith.constant 0 : index
    %97 = vector.load %arg8[%c0_22, %c0_23] : memref<4x64xf32, #tpu.memory_space<vmem>>, vector<4x64xf32>
    %cst_24 = arith.constant dense<0.000000e+00> : vector<8x64xf32>
    %98 = tpu.matmul %96, %97, %cst_24 {dimension_numbers = #tpu.dot_dimension_numbers<[1], [0], [0], [1], [0, 0, 1, 1], [], []>} : vector<8x4xf32>, vector<4x64xf32>, vector<8x64xf32> -> vector<8x64xf32>
    %99 = arith.addf %94, %98 : vector<8x64xf32>
    %c0_25 = arith.constant 0 : index
    %c0_26 = arith.constant 0 : index
    %100 = vector.load %arg9[%c0_25, %c0_26] : memref<1x64xf32, #tpu.memory_space<vmem>>, vector<1x64xf32>
    %101 = vector.broadcast %100 : vector<1x64xf32> to vector<8x64xf32>
    %102 = arith.addf %99, %101 : vector<8x64xf32>
    %cst_27 = arith.constant 0.000000e+00 : f32
    %103 = vector.broadcast %cst_27 : f32 to vector<8x64xf32>
    %104 = arith.cmpf oge, %102, %103 : vector<8x64xf32>
    %cst_28 = arith.constant 0.00999999977 : f32
    %105 = vector.broadcast %cst_28 : f32 to vector<8x64xf32>
    %106 = arith.mulf %105, %102 : vector<8x64xf32>
    %107 = arith.select %104, %102, %106 : vector<8x64xi1>, vector<8x64xf32>
    %c0_29 = arith.constant 0 : index
    %c0_30 = arith.constant 0 : index
    %108 = vector.load %arg10[%c0_29, %c0_30] : memref<64x128xf32, #tpu.memory_space<vmem>>, vector<64x128xf32>
    %cst_31 = arith.constant dense<0.000000e+00> : vector<8x128xf32>
    %109 = tpu.matmul %107, %108, %cst_31 {dimension_numbers = #tpu.dot_dimension_numbers<[1], [0], [0], [1], [0, 0, 1, 1], [], []>} : vector<8x64xf32>, vector<64x128xf32>, vector<8x128xf32> -> vector<8x128xf32>
    %c0_32 = arith.constant 0 : index
    %c0_33 = arith.constant 0 : index
    %110 = vector.load %arg11[%c0_32, %c0_33] : memref<1x128xf32, #tpu.memory_space<vmem>>, vector<1x128xf32>
    %111 = vector.broadcast %110 : vector<1x128xf32> to vector<8x128xf32>
    %112 = arith.addf %109, %111 : vector<8x128xf32>
    %c0_34 = arith.constant 0 : index
    %c0_35 = arith.constant 0 : index
    %c0_36 = arith.constant 0 : index
    %113 = vector.load %arg3[%c0_34, %c0_35, %c0_36] : memref<1x8x1xf32, #tpu.memory_space<vmem>>, vector<1x8x1xf32>
    %114 = vector.shape_cast %113 : vector<1x8x1xf32> to vector<8x1xf32>
    %115 = vector.broadcast %114 : vector<8x1xf32> to vector<8x128xf32>
    %116 = arith.mulf %112, %115 : vector<8x128xf32>
    %c0_37 = arith.constant 0 : index
    %c0_38 = arith.constant 0 : index
    %c0_39 = arith.constant 0 : index
    %117 = vector.load %arg12[%c0_37, %c0_38, %c0_39] : memref<1x8x128xf32, #tpu.memory_space<vmem>>, vector<1x8x128xf32>
    %118 = vector.shape_cast %117 : vector<1x8x128xf32> to vector<8x128xf32>
    %119 = vector.shape_cast %116 : vector<8x128xf32> to vector<1x8x128xf32>
    tpu.vector_store %arg12[%c0_37, %c0_38, %c0_39], %119 {strides = array<i32>} : memref<1x8x128xf32, #tpu.memory_space<vmem>>, vector<1x8x128xf32>,
    return
  }
  func.func @transform_0(%arg0: i32, %arg1: i32) -> (i32, i32, i32) {
    %c0_i32 = arith.constant 0 : i32
    %c0_i32_0 = arith.constant 0 : i32
    return %arg0, %arg1, %c0_i32 : i32, i32, i32
  }
  func.func @transform_1(%arg0: i32, %arg1: i32) -> (i32, i32, i32) {
    %c0_i32 = arith.constant 0 : i32
    %c0_i32_0 = arith.constant 0 : i32
    return %arg0, %arg1, %c0_i32 : i32, i32, i32
  }
  func.func @transform_2(%arg0: i32, %arg1: i32) -> (i32, i32, i32) {
    %c0_i32 = arith.constant 0 : i32
    %c0_i32_0 = arith.constant 0 : i32
    %c0_i32_1 = arith.constant 0 : i32
    return %arg0, %c0_i32, %c0_i32_0 : i32, i32, i32
  }
  func.func @transform_3(%arg0: i32, %arg1: i32) -> (i32, i32, i32) {
    %c0_i32 = arith.constant 0 : i32
    %c0_i32_0 = arith.constant 0 : i32
    return %arg0, %arg1, %c0_i32 : i32, i32, i32
  }
  func.func @transform_4(%arg0: i32, %arg1: i32) -> (i32, i32) {
    %c0_i32 = arith.constant 0 : i32
    %c0_i32_0 = arith.constant 0 : i32
    %c0_i32_1 = arith.constant 0 : i32
    return %c0_i32, %c0_i32_0 : i32, i32
  }
  func.func @transform_5(%arg0: i32, %arg1: i32) -> (i32, i32) {
    %c0_i32 = arith.constant 0 : i32
    %c0_i32_0 = arith.constant 0 : i32
    %c0_i32_1 = arith.constant 0 : i32
    return %c0_i32, %c0_i32_0 : i32, i32
  }
  func.func @transform_6(%arg0: i32, %arg1: i32) -> (i32, i32) {
    %c0_i32 = arith.constant 0 : i32
    %c0_i32_0 = arith.constant 0 : i32
    %c0_i32_1 = arith.constant 0 : i32
    return %c0_i32, %c0_i32_0 : i32, i32
  }
  func.func @transform_7(%arg0: i32, %arg1: i32) -> (i32, i32) {
    %c0_i32 = arith.constant 0 : i32
    %c0_i32_0 = arith.constant 0 : i32
    %c0_i32_1 = arith.constant 0 : i32
    return %c0_i32, %c0_i32_0 : i32, i32
  }
  func.func @transform_8(%arg0: i32, %arg1: i32) -> (i32, i32) {
    %c0_i32 = arith.constant 0 : i32
    %c0_i32_0 = arith.constant 0 : i32
    %c0_i32_1 = arith.constant 0 : i32
    return %c0_i32, %c0_i32_0 : i32, i32
  }
  func.func @transform_9(%arg0: i32, %arg1: i32) -> (i32, i32) {
    %c0_i32 = arith.constant 0 : i32
    %c0_i32_0 = arith.constant 0 : i32
    %c0_i32_1 = arith.constant 0 : i32
    return %c0_i32, %c0_i32_0 : i32, i32
  }
  func.func @transform_10(%arg0: i32, %arg1: i32) -> (i32, i32, i32) {
    %c0_i32 = arith.constant 0 : i32
    %c0_i32_0 = arith.constant 0 : i32
    return %arg0, %arg1, %c0_i32 : i32, i32, i32
  }
}

</mosaic_0001>

<bundles_post_ra>
// kernel: tpu_custom_call.1
= control target key start
LH: loop header
LB: loop body
LE: loop exit
PB: predicated region body
PF: predicated region fallthrough
CT: control target
= control target key end

     0   :  { %s2615_s0 = inlined_call_operand.vmem [shape: f32[2,8,8], index: 0, kind: input, shape index: {}]   ;;  %s2616_s1 = inlined_call_operand.vmem [shape: f32[2,8,1], index: 1, kind: input, shape index: {}]   ;;  %s2617_s2 = inlined_call_operand.vmem [shape: f32[2,8,4], index: 2, kind: input, shape index: {}]   ;;  %s2618_s3 = inlined_call_operand.vmem [shape: f32[2,8,4], index: 3, kind: input, shape index: {}]   ;;  %s2619_s4 = inlined_call_operand.vmem [shape: f32[29,4], index: 4, kind: input, shape index: {}]   ;;  %s2620_s5 = inlined_call_operand.vmem [shape: f32[4,64], index: 5, kind: input, shape index: {}]   ;;  %s2621_s6 = inlined_call_operand.vmem [shape: f32[4,64], index: 6, kind: input, shape index: {}]   ;;  %s2622_s7 = inlined_call_operand.vmem [shape: f32[1,64], index: 7, kind: input, shape index: {}]   ;;  %s2623_s8 = inlined_call_operand.vmem [shape: f32[64,128], index: 8, kind: input, shape index: {}]   ;;  %s2624_s9 = inlined_call_operand.vmem [shape: f32[1,128], index: 9, kind: input, shape index: {}]   ;;  %s2625_s10 = inlined_call_operand.hbm [shape: f32[2,8,128], index: 10, kind: output, shape index: {}]  }
   0x1   :  { %2626 = sst [smem:[#allocation5_spill]] %s2615_s0 }
   0x2   :  { %15 = vsyncpa [#allocation3], 0 }
   0x3   :  { %17 = vsyncpa [#allocation3 + $0x1], 0  ;;  %s2108_s13 = smov 0   ;;  %s2110_s14 = smov 0  }
   0x4   :  { %s2112_s15 = smov 0   ;;  %s2114_s16 = smov 0  }
   0x5   :  { %s2116_s17 = smov 0   ;;  %s2118_s18 = smov 0  }
   0x6 LB: > { %s1715_s19 = sadd.s32 4294967295, %s2024_s18   ;;  %s1716_s20 = sadd.s32 4294967294, %s2024_s18   ;;  %s2024_s18 = sphi %s2118_s18, %s23_s18   ;;  %s2020_s17 = sphi %s2116_s17, %s2634_s17   ;;  %s2016_s16 = sphi %s2114_s16, %s2633_s16   ;;  %s2012_s15 = sphi %s2112_s15, %s2632_s15   ;;  %s2008_s14 = sphi %s2110_s14, %s2631_s14   ;;  %s2004_s13 = sphi %s2108_s13, %s2630_s13  }
   0x7   : > { %s35_s21 = sadd.s32 1, %s2020_s17  ;;  %s280_s22 = sadd.s32 1, %s2012_s15 }
   0x8   : > { %p37_p0 = scmp.ge.s32.totalorder %s35_s21, 2  ;;  %p290_p1 = scmp.ne.s32.totalorder %s2012_s15, %s2008_s14 }
   0x9   : > { %p291_p2 = scmp.eq.s32.totalorder %s1715_s19, 1  ;;  %p296_p3 = scmp.ne.s32.totalorder %s2008_s14, %s2004_s13 }
   0xa   : > { %s2636_s21 = smov (%p37_p0, %s35_s21), 0  ;;  %p297_p5 = scmp.eq.s32.totalorder %s1716_s20, 1 }
   0xb   : > { %p2148_p4 = por %p291_p2, %p290_p1  ;;  %s275_s24 = ssub.s32 %s2020_s17, %s2636_s21 }
   0xc   : > { %p1719_p6 = scmp.ge.s32.totalorder %s2024_s18, 1  ;;  %p278_p7 = scmp.eq.s32.totalorder %s275_s24, 0 }
   0xd   : > { %p2155_p8 = por %p297_p5, %p296_p3  ;;  %p370_p9 = scmp.lt.s32.totalorder %s2024_s18, 3 }
   0xe   : > { %s2161_s26 = scalar_select %p278_p7, %s2012_s15, %s280_s22  }
   0xf   : > { %p371_p10 = pnand %p1719_p6, %p370_p9 }
  0x10   : > { %p428_p11 = scmp.lt.s32.totalorder (!%p371_p10), %s2016_s16, 1  ;;  %v2026_v0 = vmov (!%p371_p10), 0.0   ;;  %s2629_s0 = sld [smem:[#allocation5_spill]] (!%p371_p10)  ;;  %v2027_v19 = vmov (!%p371_p10), 683565275  }
  0x11   : > { %374 = sbr.rel (%p371_p10) target bundleno = 941 (0x3ad), region = 60  ;;  %1762 = vmatprep.subr.mxu1 (!%p371_p10), %v2026_v0  ;;  %v2028_v21 = vmov (!%p371_p10), 2475754826   ;;  %v2029_v25 = vmov (!%p371_p10), 2131351028   ;;  %s2036_s29 = smov (!%p371_p10), 104  }
  0x12   : > { %v2030_v27 = vmov (!%p371_p10), 2102212464   ;;  %v2031_v29 = vmov (!%p371_p10), 920167782   ;;  %v2032_v37 = vmov (!%p371_p10), 1326507024  }
  0x13   : > { %s2037_s30 = smov (!%p371_p10), 112   ;;  %s2038_s19 = smov (!%p371_p10), 8  }
  0x14   : > { %s2039_s20 = smov (!%p371_p10), 24   ;;  %s2044_s22 = smov (!%p371_p10), 56  }
  0x18   : > { %s429_s27 = scalar_select %p428_p11, %s2016_s16, 1 }
  0x1a   : > { %s2166_s28 = sshll.u32 %s429_s27, 3  ;;  %s2035_s27 = smov 96  }
  0x1b   : > { %s434_s11 = scalar_lea.vmem %s2629_s0, %s2166_s28  ;;  %s445_s24 = scalar_lea.vmem %s2617_s2, %s2166_s28 }
  0x1c   : > { %v2172_v1 = vld [vmem:[%s434_s11] sm:$0xff]  ;;  %s2042_s11 = smov 40  }
  0x1d   : > { %v464_v2 = vsub.f32 1.5, %v2172_v1  ;;  %v2176_v3 = vmul.f32 6.2831855, %v2172_v1  ;;  %vm457_vm0 = vcmp.gt.f32.partialorder %v2172_v1, 0.0  ;;  %vm454_vm2 = vcmp.ge.f32.partialorder %v2172_v1, 0.0 }
  0x1e   : > { %v2181_v8 = vsel %vm457_vm0, 1.0, %v2026_v0  ;;  %v1725_v16 = vsel %vm454_vm2, 1.0, %v2026_v0  ;;  %vm460_vm4 = vcmp.lt.f32.partialorder %v2172_v1, 2.0 }
  0x1f   : > { %v1728_v4 = vmul.f32 -2.0, %v464_v2  ;;  %v478_v5 = vand.u32 2139095040, %v2176_v3  ;;  %v475_v10 = vand.u32 2147483647, %v2176_v3  ;;  %vm695_vm1 = vcmp.gt.f32.partialorder %v2181_v8, 0.0 }
  0x20   : > { %v696_v13 = vsel %vm695_vm1, %v2172_v1, 1.0  ;;  %v1727_v51 = vsel %vm460_vm4, 1.0, %v2026_v0  ;;  %v894_v1 = vlaneseq  ;;  %v2033_v2 = vmov 0.0|0.0  }
  0x21   : > { %v468_v6 = vmul.f32 1.442695, %v1728_v4  ;;  %v479_v7 = vshrl.u32 %v478_v5, 23  ;;  %v482_v14 = vand.u32 8388607, %v475_v10  ;;  %v463_v63 = vmul.f32 %v1727_v51, %v1725_v16  ;;  %1791 = vmatprep.subr.bf16.mxu0 %v2033_v2 }
  0x22   : > { %v2034_v4 = vmov 1966171168   ;;  %vm477_vm11 = vcmp.lt.s32.totalorder %v2176_v3, 0  ;;  %vm476_vm12 = vcmp.le.f32.partialorder %v475_v10, 0.7853982  ;;  %vm567_vm13 = vweird.f32 %v2176_v3 }
  0x23   : > { %1936 = vpow2.f32 %v468_v6  ;;  %v1729_v9 = vadd.s32 4294967169, %v479_v7  ;;  %v483_v24 = vor.u32 8388608, %v482_v14  ;;  %v892_v5 = vunpack.c.l.s4 %v2034_v4 }
  0x24   : > { %1938 = vrcp.f32 %v696_v13  ;;  %v895_v7 = vshrl.u32 %v894_v1, 7  ;;  %vm1330_vm4 = vcmask 1043456  }
  0x25   : > { %v485_v11 = vadd.s32 1, %v1729_v9  ;;  %v523_v46 = vshll.u32 %v483_v24, 8 }
  0x27   : > { %vm486_vm3 = vcmp.gt.s32.totalorder %v485_v11, 0 }
  0x28   : > { %v487_v12 = vsel %vm486_vm3, %v485_v11, 0 }
  0x29   : > { %v489_v15 = vand.u32 31, %v487_v12  ;;  %v488_v17 = vshrl.u32 %v487_v12, 5  ;;  %v893_v12 = vunpack.c.0.s8 %v892_v5 }
  0x2b   : > { %v490_v18 = vsub.s32 32, %v489_v15  ;;  %v492_v20 = vshll.u32 %v2027_v19, %v489_v15  ;;  %v495_v22 = vshll.u32 %v2028_v21, %v489_v15  ;;  %v498_v26 = vshll.u32 %v2029_v25, %v489_v15 }
  0x2c   : > { %v501_v28 = vshll.u32 %v2030_v27, %v489_v15  ;;  %v504_v30 = vshll.u32 %v2031_v29, %v489_v15  ;;  %vm507_vm5 = vcmp.lt.s32.totalorder %v488_v17, 1  ;;  %vm509_vm6 = vcmp.lt.s32.totalorder %v488_v17, 3  ;;  %v2216_v15 = vld [vmem:[%s2619_s4] sm:$0xff] }
  0x2d   : > { %v1937_v23 = vpop.eup %1936  ;;  %v491_v32 = vshrl.u32 %v2027_v19, %v490_v18  ;;  %v493_v33 = vshrl.u32 %v2028_v21, %v490_v18  ;;  %v496_v34 = vshrl.u32 %v2029_v25, %v490_v18  ;;  %v499_v35 = vshrl.u32 %v2030_v27, %v490_v18  ;;  %v2240_v27 = vld [vmem:[%s445_s24] sm:$0xff]  ;;  %s2045_s24 = smov 64  }
  0x2e   : > { %v470_v31 = vadd.f32 1.0, %v1937_v23  ;;  %v502_v36 = vshrl.u32 %v2031_v29, %v490_v18  ;;  %v505_v38 = vshrl.u32 %v2032_v37, %v490_v18  ;;  %vm510_vm7 = vcmp.lt.s32.totalorder %v488_v17, 4  ;;  %v1939_v58 = vpop.eup %1938 }
  0x2f   : > { %v494_v39 = vor.u32 %v493_v33, %v492_v20  ;;  %v497_v40 = vor.u32 %v496_v34, %v495_v22  ;;  %v500_v41 = vor.u32 %v499_v35, %v498_v26  ;;  %vm508_vm8 = vcmp.lt.s32.totalorder %v488_v17, 2 }
  0x30   : > { %1940 = vrcp.f32 %v470_v31  ;;  %v503_v42 = vor.u32 %v502_v36, %v501_v28  ;;  %v506_v43 = vor.u32 %v505_v38, %v504_v30  ;;  %v2211_v14 = vmul.f32 %v1939_v58, %v2181_v8 }
  0x31   : > { %v511_v44 = vsel %vm507_vm5, %v491_v32, %v494_v39  ;;  %v515_v45 = vsel %vm507_vm5, %v494_v39, %v497_v40  ;;  %v512_v47 = vsel %vm510_vm7, %v500_v41, 2102212464  ;;  %v519_v49 = vsel %vm507_vm5, %v497_v40, %v500_v41 }
  0x32   : > { %v516_v48 = vsel %vm510_vm7, %v503_v42, 920167782  ;;  %v520_v50 = vsel %vm510_vm7, %v506_v43, 1326507024  ;;  %v513_v52 = vsel %vm509_vm6, %v497_v40, %v512_v47  ;;  %v2219_v17 = vsub.s32 %v893_v12, %v895_v7 }
  0x33   : > { %v517_v53 = vsel %vm509_vm6, %v500_v41, %v516_v48  ;;  %v521_v54 = vsel %vm509_vm6, %v503_v42, %v520_v50  ;;  %v514_v55 = vsel %vm508_vm8, %v511_v44, %v513_v52  ;;  %v2231_v21 = vsub.s32 0, %v895_v7 }
  0x34   : > { %v518_v56 = vsel %vm508_vm8, %v515_v45, %v517_v53  ;;  %v522_v57 = vsel %vm508_vm8, %v519_v49, %v521_v54  ;;  %v530_v6 = vmul.u32 %v523_v46, %v514_v55  ;;  %v897_v20 = vrot.slane %v2216_v15, %v2219_v17 }
  0x35   : > { %v2197_v59 = vmul.u32.u64.low %v523_v46, %v522_v57  ;;  %v2198_v60 = vmul.u32.u64.high %v523_v46, %v522_v57, %v2197_v59  ;;  %v2200_v61 = vmul.u32.u64.low %v523_v46, %v518_v56  ;;  %v2201_v62 = vmul.u32.u64.high %v523_v46, %v518_v56, %v2200_v61 }
  0x36   : > { %v905_v25 = vcombine.high %v897_v20, %v897_v20  ;;  %v913_v26 = vrot.slane %v897_v20, %v2219_v17  ;;  %v890_v5 = vcombine.high %v2216_v15, %v2216_v15  ;;  %vm1326_vm5 = vcmask 31744  }
  0x37   : > { %vm532_vm9 = vc.u32 %v2198_v60, %v2200_v61  ;;  %v533_v11 = vadd.s32 1, %v2201_v62  ;;  %v531_v51 = vadd.s32 %v2200_v61, %v2198_v60  ;;  %vm2049_vm6 = vmmov 0  }
  0x38   : > { %v927_v31 = vrot.slane %v905_v25, %v2219_v17  ;;  %v935_v32 = vcombine.high %v913_v26, %v913_v26  ;;  %v1079_v33 = vrot.slane %v913_v26, %v2231_v21  ;;  %v904_v7 = vrot.slane %v890_v5, %v2219_v17  ;;  %v883_v25 = vld [vmem:[%s2619_s4 + $0x8] sm:$0xff]  ;;  %1764 = vmatprep.mubr.msk.f32.mxu1 %vm2049_vm6, %v2026_v0 }
  0x39   : > { %v534_v16 = vsel %vm532_vm9, %v533_v11, %v2201_v62  ;;  %vm791_vm7 = vcmask 64512   ;;  %vm793_vm8 = vcmask 130048   ;;  %vm795_vm9 = vcmask 195584  }
  0x3a   : > { %v1941_v9 = vpop.eup %1940  ;;  %v535_v19 = vadd.s32 %v534_v16, %v530_v6  ;;  %v937_v35 = vcombine.high %v927_v31, %v927_v31  ;;  %v1083_v36 = vrot.slane %v927_v31, %v2231_v21  ;;  %v1221_v37 = vmul.f32 %v1079_v33, %v2240_v27 }
  0x3b   : > { %v2208_v13 = vmul.f32 %v1941_v9, %v463_v63  ;;  %v1087_v38 = vrot.slane %v935_v32, %v2231_v21  ;;  %v906_v16 = vcombine.high %v904_v7, %v904_v7  ;;  %v946_v33 = vrot.slane %v883_v25, %v2219_v17 }
  0x3c   : > { %v536_v24 = vadd.s32 536870912, %v535_v19  ;;  %v1222_v41 = vmul.f32 %v1083_v36, %v2240_v27  ;;  %v1091_v42 = vrot.slane %v937_v35, %v2231_v21 }
  0x3d   : > { %v2223_v18 = vmul.f32 %v2181_v8, %v2208_v13  ;;  %v1223_v43 = vmul.f32 %v1087_v38, %v2240_v27  ;;  %v934_v15 = vrot.slane %v906_v16, %v2219_v17 }
  0x3e   : > { %v537_v30 = vshrl.u32 %v536_v24, 30  ;;  %v1792_v45 = vpack.c.bf16 %v1222_v41, %v1221_v37  ;;  %v1224_v46 = vmul.f32 %v1091_v42, %v2240_v27  ;;  %v954_v37 = vcombine.high %v946_v33, %v946_v33 }
  0x3f   : > { %v715_v22 = vmul.f32 %v2181_v8, %v2223_v18  ;;  %v2237_v23 = vmul.f32 %v2223_v18, %v2211_v14  ;;  %v1099_v10 = vrot.slane %v934_v15, %v2231_v21  ;;  %v938_v31 = vcombine.high %v934_v15, %v934_v15 }
  0x40   : > { %v538_v34 = vshll.u32 %v537_v30, 30  ;;  %1793 = vmatpush1.bf16.msra.mxu0 %v1792_v45  ;;  %v1795_v48 = vpack.c.bf16 %v1224_v46, %v1223_v43  ;;  %v561_v4 = vsub.s32 4, %v537_v30  ;;  %v976_v42 = vrot.slane %v954_v37, %v2219_v17 }
  0x41   : > { %776 = vrot.lane.b32.xlu0 %v715_v22, %s2035_s27  ;;  %v716_v28 = vmul.f32 %v2181_v8, %v2237_v23  ;;  %v2247_v29 = vmul.f32 %v2237_v23, %v2211_v14  ;;  %1794 = vmatprep.subr.bf16.mxu0 %v2033_v2  ;;  %v1107_v36 = vrot.slane %v938_v31, %v2231_v21 }
  0x42   : > { %v539_v40 = vsub.s32 %v535_v19, %v538_v34  ;;  %v562_v61 = vsel %vm477_vm11, %v561_v4, %v537_v30  ;;  %v920_v19 = vrot.slane %v904_v7, %v2219_v17 }
  0x43   : > { %v717_v39 = vmul.f32 %v2181_v8, %v2247_v29  ;;  %v564_v12 = vsel %vm476_vm12, 0, %v562_v61 }
  0x44   : > { %v541_v44 = vsub.s32 0, %v539_v40  ;;  %1796 = vmatpush1.bf16.msra.mxu0 %v1795_v48  ;;  %v568_v20 = vadd.s32 3, %v564_v12  ;;  %v1095_v22 = vrot.slane %v920_v19, %v2231_v21  ;;  %v673_v24 = vand.u32 3, %v564_v12 }
  0x45   : > { %780 = vrot.lane.b32.xlu0 %v716_v28, %s2036_s29  ;;  %1797 = vmatprep.subr.bf16.mxu0 %v2033_v2  ;;  %v1226_v28 = vmul.f32 %v1099_v10, %v2240_v27  ;;  %v936_v30 = vcombine.high %v920_v19, %v920_v19  ;;  %s2040_s29 = smov 16  }
  0x46   : > { %v1730_v47 = vmin.u32 %v541_v44, %v539_v40  ;;  %v1225_v26 = vmul.f32 %v1095_v22, %v2240_v27  ;;  %v569_v32 = vand.u32 3, %v568_v20  ;;  %vm675_vm14 = vcmp.eq.s32.totalorder %v673_v24, 0  ;;  %v884_v22 = vld [vmem:[%s2619_s4 + $0x10] sm:$0xff] }
  0x47   : > { %v1103_v35 = vrot.slane %v936_v30, %v2231_v21  ;;  %vm678_vm1 = vcmp.eq.s32.totalorder %v673_v24, 2  ;;  %vm674_vm3 = vcmp.lt.s32.totalorder %v673_v24, 2 }
  0x48   : > { %v543_v49 = vclz %v1730_v47  ;;  %v1798_v34 = vpack.c.bf16 %v1226_v28, %v1225_v26  ;;  %vm571_vm15 = vcmp.eq.s32.totalorder %v569_v32, 0  ;;  %vm574_vm0 = vcmp.eq.s32.totalorder %v569_v32, 2 }
  0x49   : > { %784 = vrot.lane.b32.xlu0 %v717_v39, %s2037_s30  ;;  %v1227_v38 = vmul.f32 %v1103_v35, %v2240_v27  ;;  %v1228_v39 = vmul.f32 %v1107_v36, %v2240_v27  ;;  %v939_v47 = vcombine.high %v883_v25, %v883_v25  ;;  %vm570_vm2 = vcmp.lt.s32.totalorder %v569_v32, 2  ;;  %s2041_s30 = smov 32  }
  0x4a   : > { %v1731_v50 = vadd.s32 4294967294, %v543_v49  ;;  %1799 = vmatpush1.bf16.msra.mxu0 %v1798_v34  ;;  %v1115_v49 = vrot.slane %v976_v42, %v2231_v21 }
  0x4b   : > { %1800 = vmatprep.subr.bf16.mxu0 %v2033_v2  ;;  %v1801_v45 = vpack.c.bf16 %v1228_v39, %v1227_v38 }
  0x4c   : > { %vm1732_vm10 = vcmp.lt.s32.totalorder %v1731_v50, 0 }
  0x4d   : > { %v546_v52 = vsel %vm1732_vm10, 0, %v1731_v50  ;;  %vm797_vm10 = vcmask 261120  }
  0x4e   : > { %v547_v53 = vsub.s32 32, %v546_v52  ;;  %v548_v54 = vshll.u32 %v539_v40, %v546_v52  ;;  %v551_v55 = vsub.s32 4294967266, %v546_v52  ;;  %v962_v40 = vrot.slane %v946_v33, %v2219_v17  ;;  %1802 = vmatpush1.bf16.msra.mxu0 %v1801_v45 }
  0x4f   : > { %1803 = vmatprep.subr.bf16.mxu0 %v2033_v2  ;;  %v995_v33 = vrot.slane %v884_v22, %v2219_v17 }
  0x50   : > { %v549_v56 = vshrl.u32 %v531_v51, %v547_v53  ;;  %v552_v57 = vadd.s32 127, %v551_v55  ;;  %v1111_v46 = vrot.slane %v962_v40, %v2231_v21  ;;  %v2293_v51 = vmul.f32 %v2247_v29, %v2211_v14 }
  0x52   : > { %v550_v58 = vor.u32 %v549_v56, %v548_v54  ;;  %v553_v59 = vshll.u32 %v552_v57, 23  ;;  %v1229_v53 = vmul.f32 %v1111_v46, %v2240_v27  ;;  %v1230_v56 = vmul.f32 %v1115_v49, %v2240_v27 }
  0x53   : > { %v984_v57 = vcombine.high %v962_v40, %v962_v40 }
  0x54   : > { %v554_v62 = vor.u32 4788187, %v553_v59  ;;  %v557_v63 = vcvt.s32.f32 %v550_v58  ;;  %v1804_v4 = vpack.c.bf16 %v1230_v56, %v1229_v53 }
  0x56   : > { %v555_v1 = vand.u32 2147483647, %v554_v62  ;;  %v986_v62 = vcombine.high %v976_v42, %v976_v42  ;;  %1805 = vmatpush1.bf16.msra.mxu0 %v1804_v4 }
  0x57   : > { %1806 = vmatprep.subr.bf16.mxu0 %v2033_v2 }
  0x58   : > { %v558_v6 = vmul.f32 %v557_v63, %v555_v1  ;;  %v953_v63 = vrot.slane %v939_v47, %v2219_v17 }
  0x5a   : > { %v559_v60 = vxor.u32 2147483648, %v558_v6  ;;  %v969_v16 = vrot.slane %v953_v63, %v2219_v17 }
  0x5c   : > { %v560_v9 = vsel %vm477_vm11, %v559_v60, %v558_v6  ;;  %v1119_v60 = vrot.slane %v984_v57, %v2231_v21  ;;  %v1127_v31 = vrot.slane %v969_v16, %v2231_v21  ;;  %v985_v32 = vcombine.high %v969_v16, %v969_v16 }
  0x5d   : > { %v563_v11 = vsel %vm476_vm12, %v2176_v3, %v560_v9  ;;  %v1123_v3 = vrot.slane %v986_v62, %v2231_v21  ;;  %v955_v9 = vcombine.high %v953_v63, %v953_v63  ;;  %v1011_v63 = vrot.slane %v995_v33, %v2219_v17 }
  0x5e   : > { %1942 = vcosq.f32 %v563_v11  ;;  %v1231_v25 = vmul.f32 %v1119_v60, %v2240_v27  ;;  %v1233_v46 = vmul.f32 %v1127_v31, %v2240_v27  ;;  %vm799_vm11 = vcmask 326656  }
  0x5f   : > { %1944 = vsinq.f32 %v563_v11  ;;  %v1232_v26 = vmul.f32 %v1123_v3, %v2240_v27  ;;  %v983_v28 = vrot.slane %v955_v9, %v2219_v17  ;;  %v1143_v4 = vrot.slane %v1011_v63, %v2231_v21 }
  0x60   : > { %v1033_v60 = vcombine.high %v1011_v63, %v1011_v63  ;;  %vm801_vm12 = vcmask 392192  }
  0x61   : > { %v987_v47 = vcombine.high %v983_v28, %v983_v28 }
  0x62   : > { %v1151_v16 = vrot.slane %v1033_v60, %v2231_v21 }
  0x68   : > { %v1943_v41 = vpop.eup %1942 }
  0x69   : > { %v1945_v43 = vpop.eup %1944  ;;  %v575_v44 = vxor.u32 2147483648, %v1943_v41 }
  0x6a   : > { %v572_v48 = vxor.u32 2147483648, %v1945_v43 }
  0x6b   : > { %v576_v50 = vsel %vm574_vm0, %v575_v44, %v1945_v43  ;;  %v680_v52 = vsel %vm678_vm1, %v575_v44, %v1945_v43  ;;  %v1807_v43 = vpack.c.bf16 %v1232_v26, %v1231_v25  ;;  %v1131_v44 = vrot.slane %v983_v28, %v2231_v21 }
  0x6c   : > { %v573_v54 = vsel %vm571_vm15, %v1943_v41, %v572_v48  ;;  %v677_v55 = vsel %vm675_vm14, %v1943_v41, %v572_v48  ;;  %v1135_v48 = vrot.slane %v985_v32, %v2231_v21  ;;  %vm805_vm14 = vcmask 523264  }
  0x6d   : > { %v577_v58 = vsel %vm570_vm2, %v573_v54, %v576_v50  ;;  %v681_v59 = vsel %vm674_vm3, %v677_v55, %v680_v52  ;;  %v1234_v50 = vmul.f32 %v1131_v44, %v2240_v27  ;;  %v1003_v52 = vcombine.high %v995_v33, %v995_v33  ;;  %1808 = vmatpush1.bf16.msra.mxu0 %v1807_v43 }
  0x6e   : > { %v578_v14 = vsel %vm567_vm13, nan, %v577_v58  ;;  %v682_v1 = vsel %vm567_vm13, nan, %v681_v59  ;;  %1809 = vmatprep.subr.bf16.mxu0 %v2033_v2  ;;  %v1139_v59 = vrot.slane %v987_v47, %v2231_v21  ;;  %v1235_v62 = vmul.f32 %v1135_v48, %v2240_v27 }
  0x6f   : > { %v2306_v5 = vmul.f32 %v2181_v8, %v578_v14  ;;  %v2309_v6 = vmul.f32 %v2181_v8, %v682_v1  ;;  %v1810_v58 = vpack.c.bf16 %v1234_v50, %v1233_v46  ;;  %v988_v14 = vcombine.high %v884_v22, %v884_v22 }
  0x70   : > { %v1236_v1 = vmul.f32 %v1139_v59, %v2240_v27  ;;  %vm803_vm13 = vcmask 457728   ;;  %vm807_vm15 = vcmask 588800   ;;  %vm809_vm0 = vcmask 654336  }
  0x71   : > { %v704_v61 = vmul.f32 %v2237_v23, %v2306_v5  ;;  %v706_v7 = vmul.f32 %v2293_v51, %v2306_v5  ;;  %v684_v11 = vmul.f32 %v2309_v6, %v2306_v5  ;;  %v686_v12 = vmul.f32 %v2309_v6, %v2309_v6  ;;  %1811 = vmatpush1.bf16.msra.mxu0 %v1810_v58 }
  0x72   : > { %v705_v19 = vmul.f32 %v2247_v29, %v2306_v5  ;;  %v720_v15 = vmul.f32 %v2237_v23, %v2309_v6  ;;  %v687_v20 = vmul.f32 %v2306_v5, %v2306_v5  ;;  %v721_v30 = vmul.f32 %v2247_v29, %v2309_v6  ;;  %1812 = vmatprep.subr.bf16.mxu0 %v2033_v2 }
  0x73   : > { %732 = vrot.lane.b32.xlu0 %v704_v61, %s2038_s19  ;;  %740 = vrot.lane.b32.xlu1 %v706_v7, %s2039_s20  ;;  %v685_v10 = vadd.f32 %v684_v11, %v684_v11  ;;  %v722_v37 = vmul.f32 %v2293_v51, %v2309_v6  ;;  %v1002_v3 = vrot.slane %v988_v14, %v2219_v17  ;;  %vm811_vm1 = vcmask 719872  }
  0x74   : > { %v2333_v24 = vsub.f32 %v686_v12, %v687_v20  ;;  %v1813_v11 = vpack.c.bf16 %v1236_v1, %v1235_v62  ;;  %v1237_v12 = vmul.f32 %v1143_v4, %v2240_v27  ;;  %vm813_vm2 = vcmask 785408  }
  0x75   : > { %v707_v34 = vmul.f32 %v2223_v18, %v685_v10  ;;  %v689_v36 = vmul.f32 %v685_v10, %v2309_v6  ;;  %v708_v41 = vmul.f32 %v2237_v23, %v685_v10  ;;  %v693_v42 = vmul.f32 %v685_v10, %v2306_v5 }
  0x76   : > { %v2345_v35 = vmul.f32 %v2237_v23, %v2333_v24  ;;  %v690_v38 = vmul.f32 %v2333_v24, %v2306_v5  ;;  %v2354_v39 = vmul.f32 %v2247_v29, %v2333_v24  ;;  %v692_v40 = vmul.f32 %v2333_v24, %v2309_v6  ;;  %1814 = vmatpush1.bf16.msra.mxu0 %v1813_v11  ;;  %v1325_v11 = vld [vmem:[%s2621_s6] sm:$0xf] }
  0x77   : > { %736 = vrot.lane.b32.xlu0 %v705_v19, %s2040_s29  ;;  %822 = vrot.lane.b32.xlu1 %v720_v15, %s2038_s19  ;;  %v709_v55 = vmul.f32 %v2247_v29, %v685_v10  ;;  %v710_v9 = vmul.f32 %v2293_v51, %v685_v10  ;;  %v885_v19 = vld [vmem:[%s2619_s4 + $0x18] sm:$0x1f]  ;;  %v1004_v22 = vcombine.high %v1002_v3, %v1002_v3  ;;  %s2050_s19 = smov 120   ;;  %vm815_vm3 = vcmask 850944  }
  0x78   : > { %v2361_v45 = vadd.f32 %v690_v38, %v689_v36  ;;  %v2366_v49 = vsub.f32 %v692_v40, %v693_v42  ;;  %v1239_v10 = vmul.f32 %v1151_v16, %v2240_v27  ;;  %v1018_v25 = vrot.slane %v1002_v3, %v2219_v17  ;;  %1815 = vmatprep.subr.bf16.mxu0 %v2033_v2 }
  0x79   : > { %v1044_v26 = vrot.slane %v885_v19, %v2219_v17  ;;  %v1032_v31 = vrot.slane %v1004_v22, %v2219_v17  ;;  %1763 = vmatpush3.msk.msra.mxu1 %vm1330_vm4, %v1325_v11 }
  0x7a   : > { %v2371_v53 = vmul.f32 %v2237_v23, %v2361_v45  ;;  %v2375_v54 = vmul.f32 %v2247_v29, %v2361_v45  ;;  %v2380_v56 = vmul.f32 %v2237_v23, %v2366_v49  ;;  %v2384_v57 = vmul.f32 %v2247_v29, %v2366_v49  ;;  %1767 = vmatprep.subr.mxu1 %v2026_v0 }
  0x7b   : > { %744 = vrot.lane.b32.xlu0 %v707_v34, %s2041_s30  ;;  %826 = vrot.lane.b32.xlu1 %v721_v30, %s2040_s29  ;;  %v723_v23 = vmul.f32 %v2223_v18, %v2333_v24  ;;  %v1025_v29 = vrot.slane %v1003_v52, %v2219_v17  ;;  %v711_v32 = vmul.f32 %v2223_v18, %v2361_v45  ;;  %s2046_s29 = smov 72  }
  0x7c   : > { %v1159_v33 = vrot.slane %v1018_v25, %v2231_v21  ;;  %v1034_v34 = vcombine.high %v1018_v25, %v1018_v25  ;;  %v1052_v36 = vcombine.high %v1044_v26, %v1044_v26  ;;  %v1163_v38 = vrot.slane %v1032_v31, %v2231_v21 }
  0x7d   : > { %v1147_v61 = vrot.slane %v1025_v29, %v2231_v21  ;;  %v1035_v7 = vcombine.high %v1025_v29, %v1025_v29  ;;  %v1036_v40 = vcombine.high %v1032_v31, %v1032_v31  ;;  %v1059_v43 = vrot.slane %v1044_v26, %v2219_v17 }
  0x7e   : > { %v1167_v42 = vrot.slane %v1034_v34, %v2231_v21  ;;  %v1073_v44 = vrot.slane %v1052_v36, %v2219_v17  ;;  %v1242_v46 = vmul.f32 %v1163_v38, %v2240_v27 }
  0x7f   : > { %748 = vrot.lane.b32.xlu0 %v708_v41, %s2042_s11  ;;  %830 = vrot.lane.b32.xlu1 %v722_v37, %s2039_s20  ;;  %s2043_s20 = smov 48   ;;  %v1238_v15 = vmul.f32 %v1147_v61, %v2240_v27  ;;  %v1155_v20 = vrot.slane %v1035_v7, %v2231_v21  ;;  %v1241_v41 = vmul.f32 %v1159_v33, %v2240_v27 }
  0x80   : > { %v1171_v47 = vrot.slane %v1036_v40, %v2231_v21  ;;  %v1243_v48 = vmul.f32 %v1167_v42, %v2240_v27  ;;  %v1175_v50 = vrot.slane %v1059_v43, %v2231_v21  ;;  %v1179_v52 = vrot.slane %v1073_v44, %v2231_v21 }
  0x81   : > { %v1816_v28 = vpack.c.bf16 %v1238_v15, %v1237_v12  ;;  %v1240_v30 = vmul.f32 %v1155_v20, %v2240_v27  ;;  %v1074_v59 = vcombine.high %v1059_v43, %v1059_v43  ;;  %v1075_v62 = vcombine.high %v1073_v44, %v1073_v44 }
  0x82   : > { %v1244_v58 = vmul.f32 %v1171_v47, %v2240_v27  ;;  %v1245_v63 = vmul.f32 %v1175_v50, %v2240_v27  ;;  %v719_v44 = vmul.f32 %v2223_v18, %v2309_v6 }
  0x83   : > { %752 = vrot.lane.b32.xlu0 %v709_v55, %s2043_s20  ;;  %834 = vrot.lane.b32.xlu1 %v723_v23, %s2041_s30  ;;  %v1819_v37 = vpack.c.bf16 %v1240_v30, %v1239_v10  ;;  %v1822_v55 = vpack.c.bf16 %v1242_v46, %v1241_v41  ;;  %v1246_v23 = vmul.f32 %v1179_v52, %v2240_v27  ;;  %s2047_s30 = smov 80  }
  0x84   : > { %1817 = vmatpush1.bf16.msra.mxu0 %v1816_v28  ;;  %v1825_v29 = vpack.c.bf16 %v1244_v58, %v1243_v48  ;;  %v1183_v14 = vrot.slane %v1074_v59, %v2231_v21  ;;  %v1187_v1 = vrot.slane %v1075_v62, %v2231_v21  ;;  %v703_v28 = vmul.f32 %v2223_v18, %v2306_v5 }
  0x85   : > { %1818 = vmatprep.subr.bf16.mxu0 %v2033_v2  ;;  %v1828_v60 = vpack.c.bf16 %v1246_v23, %v1245_v63 }
  0x86   : > { %v1247_v61 = vmul.f32 %v1183_v14, %v2240_v27  ;;  %v1248_v7 = vmul.f32 %v1187_v1, %v2240_v27 }
  0x87   : > { %756 = vrot.lane.b32.xlu0 %v710_v9, %s2044_s22  ;;  %838 = vrot.lane.b32.xlu1 %v2345_v35, %s2042_s11  ;;  %v726_v35 = vmul.f32 %v2293_v51, %v2333_v24  ;;  %v1037_v24 = vcombine.high %v885_v19, %v885_v19  ;;  %s2048_s11 = smov 88  }
  0x88   : > { %1820 = vmatpush1.bf16.msra.mxu0 %v1819_v37 }
  0x89   : > { %1821 = vmatprep.subr.bf16.mxu0 %v2033_v2  ;;  %v1051_v4 = vrot.slane %v1037_v24, %v2219_v17 }
  0x8b   : > { %760 = vrot.lane.b32.xlu0 %v711_v32, %s2045_s24  ;;  %842 = vrot.lane.b32.xlu1 %v2354_v39, %s2043_s20  ;;  %v727_v39 = vmul.f32 %v2223_v18, %v2366_v49  ;;  %v1066_v3 = vrot.slane %v1051_v4, %v2219_v17 }
  0x8c   : > { %1823 = vmatpush1.bf16.msra.mxu0 %v1822_v55 }
  0x8d   : > { %1824 = vmatprep.subr.bf16.mxu0 %v2033_v2  ;;  %v1191_v9 = vrot.slane %v1066_v3, %v2231_v21  ;;  %v730_v21 = vmul.f32 %v2293_v51, %v2366_v49 }
  0x8f   : > { %764 = vrot.lane.b32.xlu0 %v2371_v53, %s2046_s29  ;;  %846 = vrot.lane.b32.xlu1 %v726_v35, %s2044_s22  ;;  %v714_v53 = vmul.f32 %v2293_v51, %v2361_v45  ;;  %v1831_v45 = vpack.c.bf16 %v1248_v7, %v1247_v61 }
  0x90   : > { %1826 = vmatpush1.bf16.msra.mxu0 %v1825_v29 }
  0x91   : > { %1827 = vmatprep.subr.bf16.mxu0 %v2033_v2 }
  0x93   : > { %768 = vrot.lane.b32.xlu0 %v2375_v54, %s2047_s30  ;;  %850 = vrot.lane.b32.xlu1 %v727_v39, %s2045_s24  ;;  %v718_v54 = vmul.f32 %v2181_v8, %v2293_v51  ;;  %s452_s24 = scalar_lea.vmem %s2618_s3, %s2166_s28  ;;  %v1323_v8 = vld [vmem:[%s2620_s5] sm:$0xf] }
  0x94   : > { %1829 = vmatpush1.bf16.msra.mxu0 %v1828_v60  ;;  %v1324_v17 = vld [vmem:[%s452_s24] sm:$0xff] }
  0x95   : > { %1830 = vmatprep.subr.bf16.mxu0 %v2033_v2  ;;  %1765 = vmatmul.mubr.msk.f32.vlgmr.msra.gmra.mrb[0].mxu1 %vm1326_vm5, %v1324_v17  ;;  %v1491_v17 = vld [vmem:[%s2623_s8] sm:$0xff] }
  0x96   : > { %1768 = vmatpush3.msk.msra.mxu1 %vm1330_vm4, %v1323_v8  ;;  %1769 = vmatprep.mubr.msk.f32.mxu1 %vm2049_vm6, %v2026_v0  ;;  %vm817_vm4 = vcmask 916480   ;;  %v1492_v8 = vld [vmem:[%s2623_s8 + $0x8] sm:$0xff] }
  0x97   : > { %772 = vrot.lane.b32.xlu0 %v714_v53, %s2048_s11  ;;  %854 = vrot.lane.b32.xlu1 %v2380_v56, %s2046_s29  ;;  %v1249_v56 = vmul.f32 %v1191_v9, %v2240_v27  ;;  %s1746_s29 = sshll.u32 %s2016_s16, 7  ;;  %s2052_s16 = smov [#allocation2]  }
  0x98   : > { %1832 = vmatpush1.bf16.msra.mxu0 %v1831_v45  ;;  %1833 = vmatprep.subr.bf16.mxu1 %v2033_v2 }
  0x99   : > { %1309 = vmatprep.subr.mxu0 %v2026_v0 }
  0x9b   : > { %788 = vrot.lane.b32.xlu0 %v718_v54, %s2050_s19  ;;  %858 = vrot.lane.b32.xlu1 %v2384_v57, %s2047_s30 }
  0x9c   : > { %1310 = vmatpush1.msra.mxu0 %v1249_v56  ;;  %v1493_v56 = vld [vmem:[%s2623_s8 + $0x10] sm:$0xff] }
  0x9f   : > { %862 = vrot.lane.b32.xlu1 %v730_v21, %s2048_s11  ;;  %v1834_v21 = vpack.c.bf16 %v1492_v8, %v1491_v17  ;;  %s2568_s11 = scalar_lea.hbm %s2625_s10, %s1746_s29 }
  0xa3   : > { %866 = vrot.lane.b32.xlu1 %v2208_v13, %s2035_s27  ;;  %s441_s27 = scalar_lea.vmem %s2616_s1, %s2166_s28  ;;  %s425_s28 = sand.u32 1, %s2008_s14  }
  0xa4   : > { %s1720_s20 = sshll.u32 %s425_s28, 3  ;;  %s1588_s22 = scalar_lea.sflag [#allocation3], %s425_s28 }
  0xa5   : > { %s427_s12 = scalar_lea.vmem [#allocation2], %s1720_s20  ;;  %s1950_s20 = sshll.u32 %s2052_s16, 4  ;;  %s1951_s20 = int_to_ptr.vmem [resolvable:$false] %s1950_s20 }
  0xa6   : > { %s1602_s19 = sshll.u32 %s427_s12, 4  ;;  %s1952_s0 = scalar_lea.vmem %s1951_s20, 256  ;;  %s2570_s19 = int_to_ptr.vmem [resolvable:$true] %s1602_s19 }
  0xa7   : > { %s1946_s24 = scalar_lea.vmem %s2570_s19, 128  ;;  %p1953_p1 = scmp.lt.s32.totalorder %s2570_s19, %s1951_s20 }
  0xa8   : > { %p1947_p12 = scmp.ne.s32.totalorder %s2570_s19, %s1946_s24  ;;  %p1954_p2 = scmp.lt.s32.totalorder %s1952_s0, %s1946_s24 }
  0xaa   : > { %p1948_p13 = pnand %p1947_p12, %p2148_p4  ;;  %p1955_p3 = por %p1954_p2, %p1953_p1 }
  0xac   : > { %p1949_p0 = pneg %p1948_p13 }
  0xae   : > { %p1956_p5 = pnand %p1955_p3, %p1949_p0 }
  0xb3   : > { %v777_v51 = vpop.permute.xlu0 %776 }
  0xb7   : > { %v781_v49 = vpop.permute.xlu0 %780 }
  0xbb   : > { %v2489_v57 = vpop.permute.xlu0 %784 }
  0xe5   : > { %v733_v27 = vpop.permute.xlu0 %732  ;;  %v741_v12 = vpop.permute.xlu1 %740 }
  0xe6   : > { %v792_v13 = vsel %vm791_vm7, %v703_v28, %v733_v27 }
  0xe9   : > { %v737_v16 = vpop.permute.xlu0 %736  ;;  %v823_v19 = vpop.permute.xlu1 %822 }
  0xea   : > { %v794_v34 = vsel %vm793_vm8, %v792_v13, %v737_v16  ;;  %v869_v55 = vsel %vm791_vm7, %v719_v44, %v823_v19  ;;  %vm819_vm7 = vcmask 982016   ;;  %v1496_v16 = vld [vmem:[%s2623_s8 + $0x28] sm:$0xff] }
  0xeb   : > { %v796_v38 = vsel %vm795_vm9, %v794_v34, %v741_v12  ;;  %v1495_v12 = vld [vmem:[%s2623_s8 + $0x20] sm:$0xff] }
  0xec   : > { %v1840_v19 = vpack.c.bf16 %v1496_v16, %v1495_v12 }
  0xed   : > { %v745_v15 = vpop.permute.xlu0 %744  ;;  %v827_v20 = vpop.permute.xlu1 %826 }
  0xee   : > { %v798_v5 = vsel %vm797_vm10, %v796_v38, %v745_v15  ;;  %v870_v59 = vsel %vm793_vm8, %v869_v55, %v827_v20  ;;  %v1498_v15 = vld [vmem:[%s2623_s8 + $0x38] sm:$0xff] }
  0xf1   : > { %v749_v22 = vpop.permute.xlu0 %748  ;;  %v831_v10 = vpop.permute.xlu1 %830 }
  0xf2   : > { %v800_v40 = vsel %vm799_vm11, %v798_v5, %v749_v22  ;;  %v871_v18 = vsel %vm795_vm9, %v870_v59, %v831_v10  ;;  %v2051_v22 = vmov 0   ;;  %v1579_v10 = vld [vmem:[%s441_s27] sm:$0xff] }
  0xf3   : > { %1930 = vset.pattern.permute.xlu1 %v2051_v22  ;;  %1931 = vset.pattern.permute.xlu0 %v2051_v22 }
  0xf4   : > { %1582 = vperm.xlu1 %1930, %v1579_v10  }
  0xf5   : > { %v753_v25 = vpop.permute.xlu0 %752  ;;  %v835_v26 = vpop.permute.xlu1 %834 }
  0xf6   : > { %v802_v43 = vsel %vm801_vm12, %v800_v40, %v753_v25  ;;  %v872_v62 = vsel %vm797_vm10, %v871_v18, %v835_v26  ;;  %v1742_v25 = vld [vmem:[%s2622_s7] ss:$0 sm:$0xff] }
  0xf9   : > { %v757_v30 = vpop.permute.xlu0 %756  ;;  %v839_v31 = vpop.permute.xlu1 %838 }
  0xfa   : > { %v804_v46 = vsel %vm803_vm13, %v802_v43, %v757_v30  ;;  %v873_v39 = vsel %vm799_vm11, %v872_v62, %v839_v31 }
  0xfd   : > { %v761_v32 = vpop.permute.xlu0 %760  ;;  %v843_v33 = vpop.permute.xlu1 %842 }
  0xfe   : > { %v806_v47 = vsel %vm805_vm14, %v804_v46, %v761_v32  ;;  %v874_v63 = vsel %vm801_vm12, %v873_v39, %v843_v33  ;;  %v1743_v32 = vld [vmem:[%s2624_s9] ss:$0 sm:$0xff] }
 0x101   : > { %v765_v36 = vpop.permute.xlu0 %764  ;;  %v847_v37 = vpop.permute.xlu1 %846 }
 0x102   : > { %v808_v35 = vsel %vm807_vm15, %v806_v47, %v765_v36  ;;  %v875_v23 = vsel %vm803_vm13, %v874_v63, %v847_v37 }
 0x105   : > { %v769_v41 = vpop.permute.xlu0 %768  ;;  %v851_v42 = vpop.permute.xlu1 %850 }
 0x106   : > { %v810_v52 = vsel %vm809_vm0, %v808_v35, %v769_v41  ;;  %v876_v1 = vsel %vm805_vm14, %v875_v23, %v851_v42 }
 0x109   : > { %v773_v48 = vpop.permute.xlu0 %772  ;;  %v855_v50 = vpop.permute.xlu1 %854 }
 0x10a   : > { %v812_v58 = vsel %vm811_vm1, %v810_v52, %v773_v48  ;;  %v877_v4 = vsel %vm807_vm15, %v876_v1, %v855_v50 }
 0x10b   : > { %v814_v24 = vsel %vm813_vm2, %v812_v58, %v777_v51  ;;  %v1494_v51 = vld [vmem:[%s2623_s8 + $0x18] sm:$0xff] }
 0x10c   : > { %v816_v14 = vsel %vm815_vm3, %v814_v24, %v781_v49  ;;  %v1837_v27 = vpack.c.bf16 %v1494_v51, %v1493_v56 }
 0x10d   : > { %v859_v6 = vpop.permute.xlu1 %858  ;;  %v789_v53 = vpop.permute.xlu0 %788  ;;  %v818_v61 = vsel %vm817_vm4, %v816_v14, %v2489_v57 }
 0x10e   : > { %v878_v60 = vsel %vm809_vm0, %v877_v4, %v859_v6  ;;  %v820_v45 = vsel %vm819_vm7, %v818_v61, %v789_v53 }
 0x111   : > { %v863_v29 = vpop.permute.xlu1 %862 }
 0x112   : > { %v879_v7 = vsel %vm811_vm1, %v878_v60, %v863_v29 }
 0x115   : > { %v867_v3 = vpop.permute.xlu1 %866 }
 0x116   : > { %v880_v54 = vsel %vm813_vm2, %v879_v7, %v867_v3 }
 0x117   : > { %1737 = vmatprep.mubr.msk.f32.mxu0 %vm815_vm3, %v880_v54 }
 0x118   : > { %1318 = vmatmul.mubr.f32.vlgmr.msra.gmra.mrb[0].mxu0 %v820_v45 }
 0x168   : > { %v1400_v9 = vpop.f32.mrb[0].mxu1 }
 0x169   : > { %v1766_v11 = vpop.f32.mrb[1].mxu1 }
 0x173   : > { %v1583_v34 = vpop.permute.xlu1 %1582 }
 0x1eb   : > { %v1319_v49 = vpop.f32.mrb[0].mxu0 }
 0x1ec   : > { %v1321_v57 = vpop.f32.mrb[1].mxu0  ;;  %1770 = vmatmul.mubr.msk.f32.vlgmr.msra.gmra.mrb[2].mxu1 %vm1326_vm5, %v1319_v49 }
 0x1ed   : > { %1835 = vmatpush3.bf16.msra.mxu1 %v1834_v21  ;;  %1788 = vmatprep.mubr.msk.f32.mxu1 %vm2049_vm6, %v2026_v0  ;;  %v1497_v0 = vld [vmem:[%s2623_s8 + $0x30] sm:$0xff] }
 0x1ee   : > { %1836 = vmatprep.subr.bf16.mxu1 %v2033_v2  ;;  %v1843_v20 = vpack.c.bf16 %v1498_v15, %v1497_v0 }
 0x1f1   : > { %1838 = vmatpush3.bf16.msra.mxu1 %v1837_v27 }
 0x1f2   : > { %1839 = vmatprep.subr.bf16.mxu1 %v2033_v2 }
 0x1f5   : > { %1841 = vmatpush3.bf16.msra.mxu1 %v1840_v19 }
 0x1f6   : > { %1842 = vmatprep.subr.bf16.mxu1 %v2033_v2 }
 0x1f9   : > { %1844 = vmatpush3.bf16.msra.mxu1 %v1843_v20 }
 0x2bf   : > { %v1476_v2 = vpop.f32.mrb[2].mxu1 }
 0x2c0   : > { %v1477_v26 = vadd.f32 %v1476_v2, %v1400_v9  ;;  %v1771_v28 = vpop.f32.mrb[3].mxu1 }
 0x2c2   : > { %v1487_v30 = vadd.f32 %v1742_v25, %v1477_v26 }
 0x2c4   : > { %vm1488_vm5 = vcmp.ge.f32.partialorder %v1487_v30, 0.0  ;;  %v1489_v31 = vmul.f32 0.01, %v1487_v30 }
 0x2c6   : > { %v1490_v13 = vsel %vm1488_vm5, %v1487_v30, %v1489_v31 }
 0x2c7   : > { %1789 = vmatmul.mubr.msk.f32.vlgmr.msra.gmra.mrb[4].mxu1 %vm805_vm14, %v1490_v13 }
 0x39a   : > { %v1575_v33 = vpop.f32.mrb[4].mxu1 }
 0x39b   : > { %v1576_v36 = vadd.f32 %v1743_v32, %v1575_v33  ;;  %v1790_v37 = vpop.f32.mrb[5].mxu1 }
 0x39d   : > { %v1585_v38 = vmul.f32 %v1583_v34, %v1576_v36 }
 0x39f   : > { %1586 = vst [vmem:[%s427_s12] sm:$0xff] %v1585_v38 }
 0x3a0   : > { %1959 = shalt.err (!%p1956_p5)
}
 0x3a1   : > { %s1960_s28 = scalar_lea.hbm %s2568_s11, 128  ;;  %s1964_s27 = scalar_lea.hbm %s2625_s10, 256 }
 0x3a2   : > { %p1961_p6 = scmp.ne.s32.totalorder %s2568_s11, %s1960_s28  ;;  %p1965_p10 = scmp.lt.u32.totalorder %s2568_s11, %s2625_s10 }
 0x3a3   : > { %p1966_p11 = scmp.lt.u32.totalorder %s1964_s27, %s1960_s28  ;;  %p1968_p13 = scmp.lt.u32.totalorder %s1960_s28, %s2568_s11 }
 0x3a4   : > { %p1962_p7 = pnand %p1961_p6, %p2148_p4 }
 0x3a5   : > { %p1967_p12 = por %p1966_p11, %p1965_p10 }
 0x3a6   : > { %p1963_p9 = pneg %p1962_p7 }
 0x3a7   : > { %p1969_p0 = por %p1968_p13, %p1967_p12 }
 0x3a9   : > { %p1970_p1 = pnand %p1969_p0, %p1963_p9 }
 0x3ab   : > { %1973 = shalt.err (!%p1970_p1)
}
 0x3ac   : > { %1849 = dma.vmem_to_hbm [thread:$0]  (%p2148_p4), %s2570_s19, 128, %s2568_s11, %s1588_s22  }
 0x3ad PF: > { %p1855_p2 = scmp.ge.s32.totalorder %s2024_s18, 2  ;;  %s1614_s0 = sand.u32 1, %s2004_s13  }
 0x3ae   : > { %s1615_s24 = scalar_lea.sflag [#allocation3], %s1614_s0 }
 0x3af   : > { %p1852_p3 = pnand %p1855_p2, %p2155_p8 }
 0x3b1   : > { %1999 = dma.done.wait (!%p1852_p3), %s1615_s24, 128  }
 0x3b2   : > { %2001 = vsyncadd (!%p1852_p3), %s1615_s24, 4294967168  ;;  %s23_s18 = sadd.s32 1, %s2024_s18   ;;  %s2630_s13 = smov %s2008_s14 }
 0x3b3   : > { %p20_p5 = scmp.ge.s32.totalorder %s23_s18, 4   ;;  %s2631_s14 = smov %s2012_s15 }
 0x3b4   : > { %s2632_s15 = smov %s2161_s26  ;;  %s2633_s16 = smov %s2020_s17 }
 0x3b5   : > { %s2634_s17 = smov %s2636_s21  ;;  %22 = sbr.rel (!%p20_p5) target bundleno = 6 (0x6), region = 104 }
 0x3bc   :  { %1620 = vsyncpa [#allocation3], 1 }
 0x3bd   :  { %1622 = vsyncpa [#allocation3 + $0x1], 1 }

</bundles_post_ra>
